<compile_context>
chip_gen: v5e
topology: v5e:2x2
jax: 0.10.0
libtpu: 0.0.40
codegen_flags: <defaults>
</compile_context>

<pallas_src>
import jax
import jax.numpy as jnp
from jax.experimental import pallas as pl
from jax.experimental.pallas import tpu as pltpu


def _round_up(n, m):
    return (n + m - 1) // m * m


def encoder_kernel(x_ref, w1_ref, b1_ref, w2_ref, b2_ref, wh_ref, bh_ref,
                   out_ref):
    # Entire MLP hot path fused in one kernel invocation per batch tile.
    x = x_ref[...]

    h1 = jnp.dot(x, w1_ref[...], preferred_element_type=jnp.float32) + b1_ref[...]
    h1 = jnp.maximum(h1, 0.0)

    h2 = jnp.dot(h1, w2_ref[...], preferred_element_type=jnp.float32) + b2_ref[...]
    h2 = jnp.maximum(h2, 0.0)

    # Fused mean|logvar head: one MXU push, one output stream.
    out_ref[...] = (
        jnp.dot(h2, wh_ref[...], preferred_element_type=jnp.float32) + bh_ref[...]
    )


def encoder_forward(x, params, *, block_b=512, min_pallas_batch=0):
    """VAE encoder forward pass with a fused Pallas kernel.

    x:       (B, input_dim) float32, any B (padded internally).
    params:  dict with w1 (in,64), b1 (1,64), w2 (64,32), b2 (1,32),
             wm (32,L), bm (1,L), wl (32,L), bl (1,L).
    returns: (z_mean, z_logvar), each (B, L) float32.
    """
    B, input_dim = x.shape
    latent_dim = params["wm"].shape[1]

    # Fuse the two heads into a single (32, 2L) weight / (1, 2L) bias.
    w_head = jnp.concatenate([params["wm"], params["wl"]], axis=1)
    b_head = jnp.concatenate([params["bm"], params["bl"]], axis=1)

    # For truly tiny batches the pallas_call launch overhead dominates; let
    # callers opt into a pure-XLA path (off by default so tests hit the kernel).
    if B < min_pallas_batch:
        h1 = jnp.maximum(x @ params["w1"] + params["b1"], 0.0)
        h2 = jnp.maximum(h1 @ params["w2"] + params["b2"], 0.0)
        out = h2 @ w_head + b_head
        return out[:, :latent_dim], out[:, latent_dim:]

    # --- pick the batch tile ---------------------------------------------
    # Largest tile amortizes the ~0.35 us per-grid-step overhead and fills the
    # MXU M dimension; but keep >= 2 grid steps when the batch allows it so the
    # "parallel" batch axis can shard across v7x's two TensorCores.
    b8 = _round_up(B, 8)                 # min sublane granularity
    eff_block = min(block_b, b8)
    if b8 >= 16 and eff_block > b8 // 2:
        eff_block = max(8, _round_up(b8 // 2, 8))
    padded_b = _round_up(B, eff_block)

    # Pad the batch instead of asserting divisibility (rows of zeros are
    # sliced off after the call).
    if padded_b != B:
        x = jnp.pad(x, ((0, padded_b - B), (0, 0)))

    # Weights/biases are tiny: give every grid step the full tensor. The block
    # index is constant across steps, so Pallas does not re-DMA them.
    full = lambda arr: pl.BlockSpec(arr.shape, lambda i: (0, 0))

    grid_spec = pltpu.PrefetchScalarGridSpec(
        num_scalar_prefetch=0,
        grid=(padded_b // eff_block,),
        in_specs=[
            pl.BlockSpec((eff_block, input_dim), lambda i: (i, 0)),  # x tile
            full(params["w1"]), full(params["b1"]),
            full(params["w2"]), full(params["b2"]),
            full(w_head), full(b_head),
        ],
        out_specs=pl.BlockSpec((eff_block, 2 * latent_dim), lambda i: (i, 0)),
    )

    out = pl.pallas_call(
        encoder_kernel,
        grid_spec=grid_spec,
        out_shape=jax.ShapeDtypeStruct((padded_b, 2 * latent_dim), jnp.float32),
        compiler_params=pltpu.CompilerParams(
            dimension_semantics=("parallel",),
        ),
    )(
        x,
        params["w1"], params["b1"],
        params["w2"], params["b2"],
        w_head, b_head,
    )

    out = out[:B]
    return out[:, :latent_dim], out[:, latent_dim:]


def init_encoder_params(key, input_dim, latent_dim):
    """Deterministic init mirroring nn.Linear's U(-1/sqrt(fan_in), 1/sqrt(fan_in))."""
    def linear(key, fan_in, fan_out):
        kw, kb = jax.random.split(key)
        bound = 1.0 / jnp.sqrt(float(fan_in))
        w = jax.random.uniform(kw, (fan_in, fan_out), jnp.float32, -bound, bound)
        b = jax.random.uniform(kb, (1, fan_out), jnp.float32, -bound, bound)
        return w, b

    k1, k2, k3, k4 = jax.random.split(key, 4)
    w1, b1 = linear(k1, input_dim, 64)
    w2, b2 = linear(k2, 64, 32)
    wm, bm = linear(k3, 32, latent_dim)
    wl, bl = linear(k4, 32, latent_dim)
    return dict(w1=w1, b1=b1, w2=w2, b2=b2, wm=wm, bm=bm, wl=wl, bl=bl)


def encoder_ref(x, p):
    """Pure-JAX reference for correctness checking."""
    h1 = jnp.maximum(x @ p["w1"] + p["b1"], 0.0)
    h2 = jnp.maximum(h1 @ p["w2"] + p["b2"], 0.0)
    return h2 @ p["wm"] + p["bm"], h2 @ p["wl"] + p["bl"]


if __name__ == "__main__":
    key = jax.random.PRNGKey(0)
    kx, kp = jax.random.split(key)

    batch = 16          # small batch; wrapper picks an 8-row tile, 2 grid steps
    input_dim = 16      # stands in for features_scaled.shape[1]
    latent_dim = 2

    x = jax.random.normal(kx, (batch, input_dim), jnp.float32)
    params = init_encoder_params(kp, input_dim, latent_dim)

    z_mean, z_logvar = encoder_forward(x, params)
    jax.block_until_ready((z_mean, z_logvar))

    ref_mean, ref_logvar = encoder_ref(x, params)
    assert z_mean.shape == (batch, latent_dim)
    assert z_logvar.shape == (batch, latent_dim)
    assert jnp.allclose(z_mean, ref_mean, atol=1e-5, rtol=1e-5)
    assert jnp.allclose(z_logvar, ref_logvar, atol=1e-5, rtol=1e-5)

    # Also exercise a non-divisible, larger batch to cover the padding path.
    x2 = jax.random.normal(kx, (1000, input_dim), jnp.float32)
    m2, l2 = encoder_forward(x2, params, block_b=512)
    jax.block_until_ready((m2, l2))
    rm2, rl2 = encoder_ref(x2, params)
    assert jnp.allclose(m2, rm2, atol=1e-5, rtol=1e-5)
    assert jnp.allclose(l2, rl2, atol=1e-5, rtol=1e-5)

    print("KERNEL_OK")
</pallas_src>

<mosaic_0001>
module attributes {stable_mosaic.version = 11 : i64} {
  func.func @encoder_kernel(%arg0: i32, %arg1: memref<8x16xf32, #tpu.memory_space<vmem>>, %arg2: memref<16x64xf32, #tpu.memory_space<vmem>>, %arg3: memref<1x64xf32, #tpu.memory_space<vmem>>, %arg4: memref<64x32xf32, #tpu.memory_space<vmem>>, %arg5: memref<1x32xf32, #tpu.memory_space<vmem>>, %arg6: memref<32x4xf32, #tpu.memory_space<vmem>>, %arg7: memref<1x4xf32, #tpu.memory_space<vmem>>, %arg8: memref<8x4xf32, #tpu.memory_space<vmem>>) attributes {dimension_semantics = [#tpu.dimension_semantics<parallel>], iteration_bounds = array<i64: 2>, scalar_prefetch = 0 : i64, scratch_operands = 0 : i64, tpu.core_type = #tpu.core_type<tc>, window_params = [{transform_indices = @transform_0, window_bounds = array<i64: 8, 16>}, {pipeline_mode = #tpu.pipeline_mode<synchronous>, transform_indices = @transform_1, window_bounds = array<i64: 16, 64>}, {pipeline_mode = #tpu.pipeline_mode<synchronous>, transform_indices = @transform_2, window_bounds = array<i64: 1, 64>}, {pipeline_mode = #tpu.pipeline_mode<synchronous>, transform_indices = @transform_3, window_bounds = array<i64: 64, 32>}, {pipeline_mode = #tpu.pipeline_mode<synchronous>, transform_indices = @transform_4, window_bounds = array<i64: 1, 32>}, {pipeline_mode = #tpu.pipeline_mode<synchronous>, transform_indices = @transform_5, window_bounds = array<i64: 32, 4>}, {pipeline_mode = #tpu.pipeline_mode<synchronous>, transform_indices = @transform_6, window_bounds = array<i64: 1, 4>}, {transform_indices = @transform_7, window_bounds = array<i64: 8, 4>}]} {
    %c0 = arith.constant 0 : index
    %c0_0 = arith.constant 0 : index
    %0 = vector.load %arg1[%c0, %c0_0] : memref<8x16xf32, #tpu.memory_space<vmem>>, vector<8x16xf32>
    %c0_1 = arith.constant 0 : index
    %c0_2 = arith.constant 0 : index
    %1 = vector.load %arg2[%c0_1, %c0_2] : memref<16x64xf32, #tpu.memory_space<vmem>>, vector<16x64xf32>
    %cst = arith.constant dense<0.000000e+00> : vector<8x64xf32>
    %2 = tpu.matmul %0, %1, %cst {dimension_numbers = #tpu.dot_dimension_numbers<[1], [0], [0], [1], [0, 0, 1, 1], [], []>} : vector<8x16xf32>, vector<16x64xf32>, vector<8x64xf32> -> vector<8x64xf32>
    %c0_3 = arith.constant 0 : index
    %c0_4 = arith.constant 0 : index
    %3 = vector.load %arg3[%c0_3, %c0_4] : memref<1x64xf32, #tpu.memory_space<vmem>>, vector<1x64xf32>
    %4 = vector.broadcast %3 : vector<1x64xf32> to vector<8x64xf32>
    %5 = arith.addf %2, %4 : vector<8x64xf32>
    %cst_5 = arith.constant 0.000000e+00 : f32
    %6 = vector.broadcast %cst_5 : f32 to vector<8x64xf32>
    %7 = arith.maximumf %5, %6 : vector<8x64xf32>
    %c0_6 = arith.constant 0 : index
    %c0_7 = arith.constant 0 : index
    %8 = vector.load %arg4[%c0_6, %c0_7] : memref<64x32xf32, #tpu.memory_space<vmem>>, vector<64x32xf32>
    %cst_8 = arith.constant dense<0.000000e+00> : vector<8x32xf32>
    %9 = tpu.matmul %7, %8, %cst_8 {dimension_numbers = #tpu.dot_dimension_numbers<[1], [0], [0], [1], [0, 0, 1, 1], [], []>} : vector<8x64xf32>, vector<64x32xf32>, vector<8x32xf32> -> vector<8x32xf32>
    %c0_9 = arith.constant 0 : index
    %c0_10 = arith.constant 0 : index
    %10 = vector.load %arg5[%c0_9, %c0_10] : memref<1x32xf32, #tpu.memory_space<vmem>>, vector<1x32xf32>
    %11 = vector.broadcast %10 : vector<1x32xf32> to vector<8x32xf32>
    %12 = arith.addf %9, %11 : vector<8x32xf32>
    %cst_11 = arith.constant 0.000000e+00 : f32
    %13 = vector.broadcast %cst_11 : f32 to vector<8x32xf32>
    %14 = arith.maximumf %12, %13 : vector<8x32xf32>
    %c0_12 = arith.constant 0 : index
    %c0_13 = arith.constant 0 : index
    %15 = vector.load %arg6[%c0_12, %c0_13] : memref<32x4xf32, #tpu.memory_space<vmem>>, vector<32x4xf32>
    %cst_14 = arith.constant dense<0.000000e+00> : vector<8x4xf32>
    %16 = tpu.matmul %14, %15, %cst_14 {dimension_numbers = #tpu.dot_dimension_numbers<[1], [0], [0], [1], [0, 0, 1, 1], [], []>} : vector<8x32xf32>, vector<32x4xf32>, vector<8x4xf32> -> vector<8x4xf32>
    %c0_15 = arith.constant 0 : index
    %c0_16 = arith.constant 0 : index
    %17 = vector.load %arg7[%c0_15, %c0_16] : memref<1x4xf32, #tpu.memory_space<vmem>>, vector<1x4xf32>
    %18 = vector.broadcast %17 : vector<1x4xf32> to vector<8x4xf32>
    %19 = arith.addf %16, %18 : vector<8x4xf32>
    %c0_17 = arith.constant 0 : index
    %c0_18 = arith.constant 0 : index
    %20 = vector.load %arg8[%c0_17, %c0_18] : memref<8x4xf32, #tpu.memory_space<vmem>>, vector<8x4xf32>
    tpu.vector_store %arg8[%c0_17, %c0_18], %19 {strides = array<i32>} : memref<8x4xf32, #tpu.memory_space<vmem>>, vector<8x4xf32>,
    return
  }
  func.func @transform_0(%arg0: i32) -> (i32, i32) {
    %c0_i32 = arith.constant 0 : i32
    %c0_i32_0 = arith.constant 0 : i32
    return %arg0, %c0_i32 : i32, i32
  }
  func.func @transform_1(%arg0: i32) -> (i32, i32) {
    %c0_i32 = arith.constant 0 : i32
    %c0_i32_0 = arith.constant 0 : i32
    %c0_i32_1 = arith.constant 0 : i32
    return %c0_i32, %c0_i32_0 : i32, i32
  }
  func.func @transform_2(%arg0: i32) -> (i32, i32) {
    %c0_i32 = arith.constant 0 : i32
    %c0_i32_0 = arith.constant 0 : i32
    %c0_i32_1 = arith.constant 0 : i32
    return %c0_i32, %c0_i32_0 : i32, i32
  }
  func.func @transform_3(%arg0: i32) -> (i32, i32) {
    %c0_i32 = arith.constant 0 : i32
    %c0_i32_0 = arith.constant 0 : i32
    %c0_i32_1 = arith.constant 0 : i32
    return %c0_i32, %c0_i32_0 : i32, i32
  }
  func.func @transform_4(%arg0: i32) -> (i32, i32) {
    %c0_i32 = arith.constant 0 : i32
    %c0_i32_0 = arith.constant 0 : i32
    %c0_i32_1 = arith.constant 0 : i32
    return %c0_i32, %c0_i32_0 : i32, i32
  }
  func.func @transform_5(%arg0: i32) -> (i32, i32) {
    %c0_i32 = arith.constant 0 : i32
    %c0_i32_0 = arith.constant 0 : i32
    %c0_i32_1 = arith.constant 0 : i32
    return %c0_i32, %c0_i32_0 : i32, i32
  }
  func.func @transform_6(%arg0: i32) -> (i32, i32) {
    %c0_i32 = arith.constant 0 : i32
    %c0_i32_0 = arith.constant 0 : i32
    %c0_i32_1 = arith.constant 0 : i32
    return %c0_i32, %c0_i32_0 : i32, i32
  }
  func.func @transform_7(%arg0: i32) -> (i32, i32) {
    %c0_i32 = arith.constant 0 : i32
    %c0_i32_0 = arith.constant 0 : i32
    return %arg0, %c0_i32 : i32, i32
  }
}

</mosaic_0001>

<bundles_post_ra>
// kernel: tpu_custom_call.1
= control target key start
LH: loop header
LB: loop body
LE: loop exit
PB: predicated region body
PF: predicated region fallthrough
CT: control target
= control target key end

     0   :  { %s501_s24 = smov 0   ;;  %s576_s0 = inlined_call_operand.vmem [shape: f32[16,16], index: 0, kind: input, shape index: {}]   ;;  %s577_s1 = inlined_call_operand.vmem [shape: f32[16,64], index: 1, kind: input, shape index: {}]   ;;  %s578_s2 = inlined_call_operand.vmem [shape: f32[1,64], index: 2, kind: input, shape index: {}]   ;;  %s579_s3 = inlined_call_operand.vmem [shape: f32[64,32], index: 3, kind: input, shape index: {}]   ;;  %s580_s4 = inlined_call_operand.vmem [shape: f32[1,32], index: 4, kind: input, shape index: {}]   ;;  %s581_s5 = inlined_call_operand.vmem [shape: f32[32,4], index: 5, kind: input, shape index: {}]   ;;  %s582_s6 = inlined_call_operand.vmem [shape: f32[1,4], index: 6, kind: input, shape index: {}]   ;;  %s583_s7 = inlined_call_operand.vmem [shape: f32[16,4], index: 7, kind: output, shape index: {}]  }
   0x1 LB: > { %s430_s25 = sadd.s32 4294967295, %s459_s24   ;;  %p434_p0 = scmp.ge.s32.totalorder %s459_s24, 1  ;;  %s459_s24 = sphi %s501_s24, %s17_s24  }
   0x2   : > { %p236_p1 = scmp.lt.s32.totalorder %s459_s24, 3 }
   0x4   : > { %p237_p2 = pnand %p434_p0, %p236_p1 }
   0x5   : > { %p266_p3 = scmp.lt.s32.totalorder (!%p237_p2), %s430_s25, 1 }
   0x6   : > { %240 = sbr.rel (%p237_p2) target bundleno = 410 (0x19a), region = 48 }
   0xb   : > { %v276_v0 = vld [vmem:[%s577_s1 + $0x8] sm:$0xff]  ;;  %v275_v1 = vld [vmem:[%s577_s1] sm:$0xff]  ;;  %v313_v2 = vld [vmem:[%s579_s3 + $0x38] sm:$0xff]  ;;  %s585_s25 = smov (!%p266_p3, %s430_s25), 1  ;;  %vm281_vm0 = vcmask 130048   ;;  %vm318_vm1 = vcmask 523264  }
   0xc   : > { %299 = vmatpush.msra.mxu0 %v276_v0  ;;  %330 = vmatpush.msra.mxu1 %v313_v2  ;;  %v312_v3 = vld [vmem:[%s579_s3 + $0x30] sm:$0xff]  ;;  %v311_v4 = vld [vmem:[%s579_s3 + $0x28] sm:$0xff]  ;;  %s435_s13 = sshll.u32 %s585_s25, 3  ;;  %v310_v5 = vld [vmem:[%s579_s3 + $0x20] sm:$0xff]  ;;  %vm351_vm2 = vcmask 261120   ;;  %vm375_vm3 = vcmask 31744  }
   0xd   : > { %s269_s18 = scalar_lea.vmem %s576_s0, %s435_s13  ;;  %v309_v7 = vld [vmem:[%s579_s3 + $0x18] sm:$0xff]  ;;  %v308_v8 = vld [vmem:[%s579_s3 + $0x10] sm:$0xff]  ;;  %v307_v9 = vld [vmem:[%s579_s3 + $0x8] sm:$0xff]  ;;  %s273_s23 = scalar_lea.vmem %s583_s7, %s435_s13 }
   0xe   : > { %300 = vmatpush.msra.mxu0 %v275_v1  ;;  %331 = vmatpush.msra.mxu1 %v312_v3  ;;  %v274_v6 = vld [vmem:[%s269_s18] sm:$0xff]  ;;  %v346_v11 = vld [vmem:[%s581_s5 + $0x18] sm:$0xff]  ;;  %v345_v16 = vld [vmem:[%s581_s5 + $0x10] sm:$0xff] }
   0xf   : > { %437 = vmatmul.msk.f32.vlgmr.msra.gmra.mxu0 %vm281_vm0, %v274_v6  ;;  %v306_v10 = vld [vmem:[%s579_s3] sm:$0xff]  ;;  %367 = vmatpush.msra.mxu2 %v346_v11  ;;  %v344_v17 = vld [vmem:[%s581_s5 + $0x8] sm:$0xff] }
  0x10   : > { %332 = vmatpush.msra.mxu1 %v311_v4  ;;  %v450_v12 = vld [vmem:[%s578_s2] ss:$0 sm:$0xff] }
  0x11   : > { %368 = vmatpush.msra.mxu2 %v345_v16  ;;  %v343_v18 = vld [vmem:[%s581_s5] sm:$0xff] }
  0x12   : > { %333 = vmatpush.msra.mxu1 %v310_v5  ;;  %v451_v19 = vld [vmem:[%s580_s4] ss:$0 sm:$0xff] }
  0x13   : > { %369 = vmatpush.msra.mxu2 %v344_v17  ;;  %v452_v23 = vld [vmem:[%s582_s6] ss:$0 sm:$0xff] }
  0x14   : > { %334 = vmatpush.msra.mxu1 %v309_v7 }
  0x15   : > { %370 = vmatpush.msra.mxu2 %v343_v18 }
  0x16   : > { %335 = vmatpush.msra.mxu1 %v308_v8 }
  0x18   : > { %336 = vmatpush.msra.mxu1 %v307_v9 }
  0x1a   : > { %337 = vmatpush.msra.mxu1 %v306_v10 }
  0x8c   : > { %v302_v13 = vpop.f32.mrf.mxu0 }
  0x8d   : > { %v303_v14 = vadd.f32 %v450_v12, %v302_v13 }
  0x8f   : > { %v305_v15 = vmax.f32 %v303_v14, 0.0 }
  0x91   : > { %438 = vmatmul.msk.f32.vlgmr.msra.gmra.mxu1 %vm318_vm1, %v305_v15 }
 0x10e   : > { %v339_v20 = vpop.f32.mrf.mxu1 }
 0x10f   : > { %v340_v21 = vadd.f32 %v451_v19, %v339_v20 }
 0x111   : > { %v342_v22 = vmax.f32 %v340_v21, 0.0 }
 0x113   : > { %439 = vmatmul.msk.f32.vlgmr.msra.gmra.mxu2 %vm351_vm2, %v342_v22 }
 0x196   : > { %v372_v24 = vpop.f32.mrf.mxu2 }
 0x197   : > { %v373_v25 = vadd.f32 %v452_v23, %v372_v24 }
 0x199   : > { %376 = vst.msk [vmem:[%s273_s23] sm:$0xff] %vm375_vm3, %v373_v25 }
 0x19a PF: > { %s17_s24 = sadd.s32 1, %s459_s24  }
 0x19b   : > { %p14_p4 = scmp.ge.s32.totalorder %s17_s24, 4  }
 0x19d   :  { %16 = sbr.rel (!%p14_p4) target bundleno = 1 (0x1), region = 78 }

</bundles_post_ra>
